<compile_context>
chip_gen: v6e
topology: v6e:2x2x1
jax: 0.10.0
libtpu: 0.0.40
codegen_flags: <defaults>
</compile_context>

<pallas_src>
import jax
import jax.numpy as jnp
from jax.experimental import pallas as pl
from jax.experimental.pallas import tpu as pltpu


def _round_up(x, m):
    return ((x + m - 1) // m) * m


def rgb_mlp_kernel(p_ref, poly_ref, c_ref,
                   wp_ref, bp_ref,
                   w1_ref, b1_ref,
                   w2_ref, b2_ref,
                   w3_ref, b3_ref,
                   out_ref, x_slab):
    """One batch tile of the fused 4-layer MLP (bf16 MXU inputs, f32 accumulate)."""
    bf16 = jnp.bfloat16
    text_dim = p_ref.shape[1]
    total = 2 * text_dim + 32
    k_pad = x_slab.shape[1]

    # ---- poly branch: Linear(poly_dim, 32) + ReLU (Dropout = identity, eval) ----
    poly_feat = jnp.dot(poly_ref[...].astype(bf16), wp_ref[...],
                        preferred_element_type=jnp.float32) + bp_ref[...]
    poly_feat = jnp.maximum(poly_feat, 0.0)

    # ---- build the fused layer-1 input slab: [p_txt | poly_feat | c_txt | 0] ----
    # Casts to bf16 happen here (in-kernel) so the wrapper never touches HBM for it.
    x_slab[:, 0:text_dim] = p_ref[...].astype(bf16)
    x_slab[:, text_dim:text_dim + 32] = poly_feat.astype(bf16)
    x_slab[:, text_dim + 32:total] = c_ref[...].astype(bf16)
    if k_pad > total:
        # Static branch: zero the pad lanes every step (W1 pad rows are zero too,
        # but this guards against stale inf/nan in uninitialized scratch VMEM).
        x_slab[:, total:] = jnp.zeros((x_slab.shape[0], k_pad - total), bf16)

    # ---- Linear(total, 256) + ReLU: single K = k_pad MXU pass ----
    h1 = jnp.maximum(
        jnp.dot(x_slab[...], w1_ref[...], preferred_element_type=jnp.float32)
        + b1_ref[...], 0.0).astype(bf16)

    # ---- Linear(256, 128) + ReLU ----
    h2 = jnp.maximum(
        jnp.dot(h1, w2_ref[...], preferred_element_type=jnp.float32)
        + b2_ref[...], 0.0).astype(bf16)

    # ---- Linear(128, 3) + Sigmoid, scaled to [0, 255]; lane-dense 128-col store ----
    logits = jnp.dot(h2, w3_ref[...], preferred_element_type=jnp.float32) + b3_ref[...]
    out_ref[...] = jax.nn.sigmoid(logits) * 255.0


def rgb_prediction_forward(p_txt, poly, c_txt, params, *, tile_b=2048):
    """Batch-tiled Pallas call; weights stay resident in VMEM across tiles."""
    B, text_dim = p_txt.shape
    poly_dim = poly.shape[1]
    k_pad = params["w1"].shape[0]          # padded layer-1 input width (mult. of 128)
    out_cols = params["w3"].shape[1]       # 128 (lane-dense padded output)

    # Shrink the tile for small batches (avoid thousands of padded rows) while
    # keeping >= 2 grid steps when possible so the "parallel" batch axis can
    # shard across both TensorCores on v7x.
    if B <= tile_b:
        target = pl.cdiv(B, 2) if B >= 256 else B
        tile_b = max(16, _round_up(target, 16))

    n_tiles = pl.cdiv(B, tile_b)
    B_pad = n_tiles * tile_b
    if B_pad != B:
        pad = ((0, B_pad - B), (0, 0))
        p_txt = jnp.pad(p_txt, pad)
        poly = jnp.pad(poly, pad)
        c_txt = jnp.pad(c_txt, pad)

    def tiled_spec(ncols):
        # Batch-tiled f32 operand: block i along batch, full feature width.
        return pl.BlockSpec((tile_b, ncols), lambda i: (i, 0))

    def resident_spec(shape):
        # Constant index_map -> stays resident in VMEM across all grid steps.
        return pl.BlockSpec(shape, lambda i: (0, 0))

    in_specs = [
        tiled_spec(text_dim),                 # p_txt (f32, cast in-kernel)
        tiled_spec(poly_dim),                 # poly  (10 lanes; tiny contiguous DMA)
        tiled_spec(text_dim),                 # c_txt (f32, cast in-kernel)
        resident_spec(params["wp"].shape),
        resident_spec(params["bp"].shape),
        resident_spec(params["w1"].shape),
        resident_spec(params["b1"].shape),
        resident_spec(params["w2"].shape),
        resident_spec(params["b2"].shape),
        resident_spec(params["w3"].shape),
        resident_spec(params["b3"].shape),
    ]
    out_spec = pl.BlockSpec((tile_b, out_cols), lambda i: (i, 0))

    weight_bytes = sum(int(v.size) * v.dtype.itemsize for v in params.values())
    flops = 2 * B_pad * (poly_dim * 32 + k_pad * 256 + 256 * 128 + 128 * out_cols)
    bytes_accessed = (B_pad * (2 * text_dim + poly_dim) * 4
                      + B_pad * out_cols * 4 + weight_bytes)

    # Scoped-VMEM cap for large tiles: double-buffered batch tiles + bf16 slab +
    # f32 h1/h2 temporaries + weights, clamped well under v7x's 64 MiB physical.
    est = (2 * tile_b * (2 * text_dim + poly_dim) * 4   # double-buffered inputs
           + 2 * tile_b * out_cols * 4                  # double-buffered output
           + tile_b * k_pad * 2                         # bf16 layer-1 slab
           + tile_b * (256 + 128) * 4                   # h1 / h2 temporaries
           + weight_bytes + (4 << 20))                  # weights + headroom
    vmem_limit = int(min(max(est, 32 << 20), 48 << 20))

    out = pl.pallas_call(
        rgb_mlp_kernel,
        out_shape=jax.ShapeDtypeStruct((B_pad, out_cols), jnp.float32),
        grid=(n_tiles,),
        in_specs=in_specs,
        out_specs=out_spec,
        scratch_shapes=[pltpu.VMEM((tile_b, k_pad), jnp.bfloat16)],
        compiler_params=pltpu.CompilerParams(
            dimension_semantics=("parallel",),
            vmem_limit_bytes=vmem_limit),
        cost_estimate=pl.CostEstimate(
            flops=int(flops),
            transcendentals=int(B_pad * out_cols),
            bytes_accessed=int(bytes_accessed)),
    )(p_txt, poly, c_txt,
      params["wp"], params["bp"],
      params["w1"], params["b1"],
      params["w2"], params["b2"],
      params["w3"], params["b3"])

    return out[:B, :3]


def init_params(key, text_dim, poly_dim=10):
    """Deterministic params matching nn.Linear shapes, stored as (in, out).

    Weights are bf16 (MXU-native); biases stay f32 (VPU path). W1 is zero-padded
    along the input dim to a multiple of 128 (matches the kernel's layer-1 slab);
    W3/b3 are zero-padded to 128 output columns (lane-dense store; pad columns of
    b3 are zero so sigmoid on pad lanes stays finite).
    """
    total = text_dim * 2 + 32
    k_pad = _round_up(total, 128)
    out_pad = 128
    ks = jax.random.split(key, 8)

    def lin(k_w, k_b, fan_in, fan_out):
        bound = 1.0 / jnp.sqrt(float(fan_in))
        w = jax.random.uniform(k_w, (fan_in, fan_out), jnp.float32, -bound, bound)
        b = jax.random.uniform(k_b, (1, fan_out), jnp.float32, -bound, bound)
        return w, b

    wp, bp = lin(ks[0], ks[1], poly_dim, 32)
    w1, b1 = lin(ks[2], ks[3], total, 256)   # rows already in concat order [p|poly|c]
    w2, b2 = lin(ks[4], ks[5], 256, 128)
    w3, b3 = lin(ks[6], ks[7], 128, 3)

    w1_pad = jnp.zeros((k_pad, 256), jnp.float32).at[:total].set(w1)
    w3_pad = jnp.zeros((128, out_pad), jnp.float32).at[:, :3].set(w3)
    b3_pad = jnp.zeros((1, out_pad), jnp.float32).at[:, :3].set(b3)

    bf16 = jnp.bfloat16
    return {
        "wp": wp.astype(bf16), "bp": bp,
        "w1": w1_pad.astype(bf16), "b1": b1,
        "w2": w2.astype(bf16), "b2": b2,
        "w3": w3_pad.astype(bf16), "b3": b3_pad,
    }


def reference_forward(p_txt, poly, c_txt, params):
    """Pure-JAX reference mirroring the kernel's bf16-input / f32-accumulate numerics."""
    bf16 = jnp.bfloat16
    text_dim = p_txt.shape[1]
    total = 2 * text_dim + 32
    poly_feat = jnp.maximum(
        jnp.dot(poly.astype(bf16), params["wp"],
                preferred_element_type=jnp.float32) + params["bp"], 0.0)
    x = jnp.concatenate([p_txt, poly_feat, c_txt], axis=1).astype(bf16)
    h1 = jnp.maximum(
        jnp.dot(x, params["w1"][:total],
                preferred_element_type=jnp.float32) + params["b1"], 0.0)
    h2 = jnp.maximum(
        jnp.dot(h1.astype(bf16), params["w2"],
                preferred_element_type=jnp.float32) + params["b2"], 0.0)
    logits = (jnp.dot(h2.astype(bf16), params["w3"][:, :3],
                      preferred_element_type=jnp.float32) + params["b3"][:, :3])
    return jax.nn.sigmoid(logits) * 255.0


if __name__ == "__main__":
    key = jax.random.PRNGKey(0)
    B, TEXT_DIM, POLY_DIM = 2, 32, 10

    k_in, k_par = jax.random.split(key)
    k1, k2, k3 = jax.random.split(k_in, 3)
    p_txt = jax.random.normal(k1, (B, TEXT_DIM), jnp.float32)
    poly = jax.random.normal(k2, (B, POLY_DIM), jnp.float32)
    c_txt = jax.random.normal(k3, (B, TEXT_DIM), jnp.float32)

    params = init_params(k_par, TEXT_DIM, POLY_DIM)

    out = rgb_prediction_forward(p_txt, poly, c_txt, params)
    out = jax.block_until_ready(out)

    ref = reference_forward(p_txt, poly, c_txt, params)
    assert out.shape == (B, 3)
    max_err = float(jnp.max(jnp.abs(out - ref)))
    assert jnp.allclose(out, ref, atol=1e-2, rtol=1e-3), f"max abs err = {max_err}"

    print("KERNEL_OK")
</pallas_src>

<mosaic_0001>
module attributes {stable_mosaic.version = 11 : i64} {
  func.func @rgb_mlp_kernel(%arg0: i32, %arg1: memref<16x32xf32, #tpu.memory_space<vmem>>, %arg2: memref<16x10xf32, #tpu.memory_space<vmem>>, %arg3: memref<16x32xf32, #tpu.memory_space<vmem>>, %arg4: memref<10x32xbf16, #tpu.memory_space<vmem>>, %arg5: memref<1x32xf32, #tpu.memory_space<vmem>>, %arg6: memref<128x256xbf16, #tpu.memory_space<vmem>>, %arg7: memref<1x256xf32, #tpu.memory_space<vmem>>, %arg8: memref<256x128xbf16, #tpu.memory_space<vmem>>, %arg9: memref<1x128xf32, #tpu.memory_space<vmem>>, %arg10: memref<128x128xbf16, #tpu.memory_space<vmem>>, %arg11: memref<1x128xf32, #tpu.memory_space<vmem>>, %arg12: memref<16x128xf32, #tpu.memory_space<vmem>>, %arg13: memref<16x128xbf16, #tpu.memory_space<vmem>>) attributes {dimension_semantics = [#tpu.dimension_semantics<parallel>], iteration_bounds = array<i64: 1>, scalar_prefetch = 0 : i64, scratch_operands = 1 : i64, tpu.core_type = #tpu.core_type<tc>, window_params = [{transform_indices = @transform_0, window_bounds = array<i64: 16, 32>}, {transform_indices = @transform_1, window_bounds = array<i64: 16, 10>}, {transform_indices = @transform_2, window_bounds = array<i64: 16, 32>}, {pipeline_mode = #tpu.pipeline_mode<synchronous>, transform_indices = @transform_3, window_bounds = array<i64: 10, 32>}, {pipeline_mode = #tpu.pipeline_mode<synchronous>, transform_indices = @transform_4, window_bounds = array<i64: 1, 32>}, {pipeline_mode = #tpu.pipeline_mode<synchronous>, transform_indices = @transform_5, window_bounds = array<i64: 128, 256>}, {pipeline_mode = #tpu.pipeline_mode<synchronous>, transform_indices = @transform_6, window_bounds = array<i64: 1, 256>}, {pipeline_mode = #tpu.pipeline_mode<synchronous>, transform_indices = @transform_7, window_bounds = array<i64: 256, 128>}, {pipeline_mode = #tpu.pipeline_mode<synchronous>, transform_indices = @transform_8, window_bounds = array<i64: 1, 128>}, {pipeline_mode = #tpu.pipeline_mode<synchronous>, transform_indices = @transform_9, window_bounds = array<i64: 128, 128>}, {pipeline_mode = #tpu.pipeline_mode<synchronous>, transform_indices = @transform_10, window_bounds = array<i64: 1, 128>}, {transform_indices = @transform_11, window_bounds = array<i64: 16, 128>}]} {
    %c0 = arith.constant 0 : index
    %c0_0 = arith.constant 0 : index
    %0 = vector.load %arg2[%c0, %c0_0] : memref<16x10xf32, #tpu.memory_space<vmem>>, vector<16x10xf32>
    %1 = arith.truncf %0 : vector<16x10xf32> to vector<16x10xbf16>
    %c0_1 = arith.constant 0 : index
    %c0_2 = arith.constant 0 : index
    %2 = vector.load %arg4[%c0_1, %c0_2] : memref<10x32xbf16, #tpu.memory_space<vmem>>, vector<10x32xbf16>
    %cst = arith.constant dense<0.000000e+00> : vector<16x32xf32>
    %3 = tpu.matmul %1, %2, %cst {dimension_numbers = #tpu.dot_dimension_numbers<[1], [0], [0], [1], [0, 0, 1, 1], [], []>} : vector<16x10xbf16>, vector<10x32xbf16>, vector<16x32xf32> -> vector<16x32xf32>
    %c0_3 = arith.constant 0 : index
    %c0_4 = arith.constant 0 : index
    %4 = vector.load %arg5[%c0_3, %c0_4] : memref<1x32xf32, #tpu.memory_space<vmem>>, vector<1x32xf32>
    %5 = vector.broadcast %4 : vector<1x32xf32> to vector<16x32xf32>
    %6 = arith.addf %3, %5 : vector<16x32xf32>
    %cst_5 = arith.constant 0.000000e+00 : f32
    %7 = vector.broadcast %cst_5 : f32 to vector<16x32xf32>
    %8 = arith.maximumf %6, %7 : vector<16x32xf32>
    %c0_6 = arith.constant 0 : index
    %c0_7 = arith.constant 0 : index
    %9 = vector.load %arg1[%c0_6, %c0_7] : memref<16x32xf32, #tpu.memory_space<vmem>>, vector<16x32xf32>
    %10 = arith.truncf %9 : vector<16x32xf32> to vector<16x32xbf16>
    %c0_8 = arith.constant 0 : index
    %c0_9 = arith.constant 0 : index
    %11 = vector.load %arg13[%c0_8, %c0_9] : memref<16x128xbf16, #tpu.memory_space<vmem>>, vector<16x32xbf16>
    tpu.vector_store %arg13[%c0_8, %c0_9], %10 {strides = array<i32>} : memref<16x128xbf16, #tpu.memory_space<vmem>>, vector<16x32xbf16>,
    %12 = arith.truncf %8 : vector<16x32xf32> to vector<16x32xbf16>
    %c0_10 = arith.constant 0 : index
    %c32 = arith.constant 32 : index
    %13 = vector.load %arg13[%c0_10, %c32] : memref<16x128xbf16, #tpu.memory_space<vmem>>, vector<16x32xbf16>
    tpu.vector_store %arg13[%c0_10, %c32], %12 {strides = array<i32>} : memref<16x128xbf16, #tpu.memory_space<vmem>>, vector<16x32xbf16>,
    %c0_11 = arith.constant 0 : index
    %c0_12 = arith.constant 0 : index
    %14 = vector.load %arg3[%c0_11, %c0_12] : memref<16x32xf32, #tpu.memory_space<vmem>>, vector<16x32xf32>
    %15 = arith.truncf %14 : vector<16x32xf32> to vector<16x32xbf16>
    %c0_13 = arith.constant 0 : index
    %c64 = arith.constant 64 : index
    %16 = vector.load %arg13[%c0_13, %c64] : memref<16x128xbf16, #tpu.memory_space<vmem>>, vector<16x32xbf16>
    tpu.vector_store %arg13[%c0_13, %c64], %15 {strides = array<i32>} : memref<16x128xbf16, #tpu.memory_space<vmem>>, vector<16x32xbf16>,
    %cst_14 = arith.constant 0.000000e+00 : bf16
    %17 = vector.broadcast %cst_14 : bf16 to vector<16x32xbf16>
    %c0_15 = arith.constant 0 : index
    %c96 = arith.constant 96 : index
    %18 = vector.load %arg13[%c0_15, %c96] : memref<16x128xbf16, #tpu.memory_space<vmem>>, vector<16x32xbf16>
    tpu.vector_store %arg13[%c0_15, %c96], %17 {strides = array<i32>} : memref<16x128xbf16, #tpu.memory_space<vmem>>, vector<16x32xbf16>,
    %c0_16 = arith.constant 0 : index
    %c0_17 = arith.constant 0 : index
    %19 = vector.load %arg13[%c0_16, %c0_17] : memref<16x128xbf16, #tpu.memory_space<vmem>>, vector<16x128xbf16>
    %c0_18 = arith.constant 0 : index
    %c0_19 = arith.constant 0 : index
    %20 = vector.load %arg6[%c0_18, %c0_19] : memref<128x256xbf16, #tpu.memory_space<vmem>>, vector<128x256xbf16>
    %cst_20 = arith.constant dense<0.000000e+00> : vector<16x256xf32>
    %21 = tpu.matmul %19, %20, %cst_20 {dimension_numbers = #tpu.dot_dimension_numbers<[1], [0], [0], [1], [0, 0, 1, 1], [], []>} : vector<16x128xbf16>, vector<128x256xbf16>, vector<16x256xf32> -> vector<16x256xf32>
    %c0_21 = arith.constant 0 : index
    %c0_22 = arith.constant 0 : index
    %22 = vector.load %arg7[%c0_21, %c0_22] : memref<1x256xf32, #tpu.memory_space<vmem>>, vector<1x256xf32>
    %23 = vector.broadcast %22 : vector<1x256xf32> to vector<16x256xf32>
    %24 = arith.addf %21, %23 : vector<16x256xf32>
    %cst_23 = arith.constant 0.000000e+00 : f32
    %25 = vector.broadcast %cst_23 : f32 to vector<16x256xf32>
    %26 = arith.maximumf %24, %25 : vector<16x256xf32>
    %27 = arith.truncf %26 : vector<16x256xf32> to vector<16x256xbf16>
    %c0_24 = arith.constant 0 : index
    %c0_25 = arith.constant 0 : index
    %28 = vector.load %arg8[%c0_24, %c0_25] : memref<256x128xbf16, #tpu.memory_space<vmem>>, vector<256x128xbf16>
    %cst_26 = arith.constant dense<0.000000e+00> : vector<16x128xf32>
    %29 = tpu.matmul %27, %28, %cst_26 {dimension_numbers = #tpu.dot_dimension_numbers<[1], [0], [0], [1], [0, 0, 1, 1], [], []>} : vector<16x256xbf16>, vector<256x128xbf16>, vector<16x128xf32> -> vector<16x128xf32>
    %c0_27 = arith.constant 0 : index
    %c0_28 = arith.constant 0 : index
    %30 = vector.load %arg9[%c0_27, %c0_28] : memref<1x128xf32, #tpu.memory_space<vmem>>, vector<1x128xf32>
    %31 = vector.broadcast %30 : vector<1x128xf32> to vector<16x128xf32>
    %32 = arith.addf %29, %31 : vector<16x128xf32>
    %cst_29 = arith.constant 0.000000e+00 : f32
    %33 = vector.broadcast %cst_29 : f32 to vector<16x128xf32>
    %34 = arith.maximumf %32, %33 : vector<16x128xf32>
    %35 = arith.truncf %34 : vector<16x128xf32> to vector<16x128xbf16>
    %c0_30 = arith.constant 0 : index
    %c0_31 = arith.constant 0 : index
    %36 = vector.load %arg10[%c0_30, %c0_31] : memref<128x128xbf16, #tpu.memory_space<vmem>>, vector<128x128xbf16>
    %cst_32 = arith.constant dense<0.000000e+00> : vector<16x128xf32>
    %37 = tpu.matmul %35, %36, %cst_32 {dimension_numbers = #tpu.dot_dimension_numbers<[1], [0], [0], [1], [0, 0, 1, 1], [], []>} : vector<16x128xbf16>, vector<128x128xbf16>, vector<16x128xf32> -> vector<16x128xf32>
    %c0_33 = arith.constant 0 : index
    %c0_34 = arith.constant 0 : index
    %38 = vector.load %arg11[%c0_33, %c0_34] : memref<1x128xf32, #tpu.memory_space<vmem>>, vector<1x128xf32>
    %39 = vector.broadcast %38 : vector<1x128xf32> to vector<16x128xf32>
    %40 = arith.addf %37, %39 : vector<16x128xf32>
    %41 = arith.negf %40 : vector<16x128xf32>
    %42 = math.exp %41 : vector<16x128xf32>
    %cst_35 = arith.constant 1.000000e+00 : f32
    %43 = vector.broadcast %cst_35 : f32 to vector<16x128xf32>
    %44 = arith.addf %43, %42 : vector<16x128xf32>
    %45 = arith.divf %43, %44 : vector<16x128xf32>
    %cst_36 = arith.constant 2.550000e+02 : f32
    %46 = vector.broadcast %cst_36 : f32 to vector<16x128xf32>
    %47 = arith.mulf %45, %46 : vector<16x128xf32>
    %c0_37 = arith.constant 0 : index
    %c0_38 = arith.constant 0 : index
    %48 = vector.load %arg12[%c0_37, %c0_38] : memref<16x128xf32, #tpu.memory_space<vmem>>, vector<16x128xf32>
    tpu.vector_store %arg12[%c0_37, %c0_38], %47 {strides = array<i32>} : memref<16x128xf32, #tpu.memory_space<vmem>>, vector<16x128xf32>,
    return
  }
  func.func @transform_0(%arg0: i32) -> (i32, i32) {
    %c0_i32 = arith.constant 0 : i32
    %c0_i32_0 = arith.constant 0 : i32
    return %arg0, %c0_i32 : i32, i32
  }
  func.func @transform_1(%arg0: i32) -> (i32, i32) {
    %c0_i32 = arith.constant 0 : i32
    %c0_i32_0 = arith.constant 0 : i32
    return %arg0, %c0_i32 : i32, i32
  }
  func.func @transform_2(%arg0: i32) -> (i32, i32) {
    %c0_i32 = arith.constant 0 : i32
    %c0_i32_0 = arith.constant 0 : i32
    return %arg0, %c0_i32 : i32, i32
  }
  func.func @transform_3(%arg0: i32) -> (i32, i32) {
    %c0_i32 = arith.constant 0 : i32
    %c0_i32_0 = arith.constant 0 : i32
    %c0_i32_1 = arith.constant 0 : i32
    return %c0_i32, %c0_i32_0 : i32, i32
  }
  func.func @transform_4(%arg0: i32) -> (i32, i32) {
    %c0_i32 = arith.constant 0 : i32
    %c0_i32_0 = arith.constant 0 : i32
    %c0_i32_1 = arith.constant 0 : i32
    return %c0_i32, %c0_i32_0 : i32, i32
  }
  func.func @transform_5(%arg0: i32) -> (i32, i32) {
    %c0_i32 = arith.constant 0 : i32
    %c0_i32_0 = arith.constant 0 : i32
    %c0_i32_1 = arith.constant 0 : i32
    return %c0_i32, %c0_i32_0 : i32, i32
  }
  func.func @transform_6(%arg0: i32) -> (i32, i32) {
    %c0_i32 = arith.constant 0 : i32
    %c0_i32_0 = arith.constant 0 : i32
    %c0_i32_1 = arith.constant 0 : i32
    return %c0_i32, %c0_i32_0 : i32, i32
  }
  func.func @transform_7(%arg0: i32) -> (i32, i32) {
    %c0_i32 = arith.constant 0 : i32
    %c0_i32_0 = arith.constant 0 : i32
    %c0_i32_1 = arith.constant 0 : i32
    return %c0_i32, %c0_i32_0 : i32, i32
  }
  func.func @transform_8(%arg0: i32) -> (i32, i32) {
    %c0_i32 = arith.constant 0 : i32
    %c0_i32_0 = arith.constant 0 : i32
    %c0_i32_1 = arith.constant 0 : i32
    return %c0_i32, %c0_i32_0 : i32, i32
  }
  func.func @transform_9(%arg0: i32) -> (i32, i32) {
    %c0_i32 = arith.constant 0 : i32
    %c0_i32_0 = arith.constant 0 : i32
    %c0_i32_1 = arith.constant 0 : i32
    return %c0_i32, %c0_i32_0 : i32, i32
  }
  func.func @transform_10(%arg0: i32) -> (i32, i32) {
    %c0_i32 = arith.constant 0 : i32
    %c0_i32_0 = arith.constant 0 : i32
    %c0_i32_1 = arith.constant 0 : i32
    return %c0_i32, %c0_i32_0 : i32, i32
  }
  func.func @transform_11(%arg0: i32) -> (i32, i32) {
    %c0_i32 = arith.constant 0 : i32
    %c0_i32_0 = arith.constant 0 : i32
    return %arg0, %c0_i32 : i32, i32
  }
}

</mosaic_0001>

<bundles_post_ra>
// kernel: tpu_custom_call.1
= control target key start
LH: loop header
LB: loop body
LE: loop exit
PB: predicated region body
PF: predicated region fallthrough
CT: control target
= control target key end

     0   :  { %16 = vsyncpa [#allocation4], 0  ;;  %s1257_s0 = inlined_call_operand.hbm [shape: f32[16,32], index: 0, kind: input, shape index: {}]   ;;  %s1258_s1 = inlined_call_operand.hbm [shape: f32[16,10], index: 1, kind: input, shape index: {}]   ;;  %s1259_s2 = inlined_call_operand.hbm [shape: f32[16,32], index: 2, kind: input, shape index: {}]   ;;  %s1260_s3 = inlined_call_operand.hbm [shape: bf16[10,32], index: 3, kind: input, shape index: {}]   ;;  %s1261_s4 = inlined_call_operand.vmem [shape: f32[1,32], index: 4, kind: input, shape index: {}]   ;;  %s1262_s5 = inlined_call_operand.hbm [shape: bf16[128,256], index: 5, kind: input, shape index: {}]   ;;  %s1263_s6 = inlined_call_operand.vmem [shape: f32[1,256], index: 6, kind: input, shape index: {}]   ;;  %s1264_s7 = inlined_call_operand.hbm [shape: bf16[256,128], index: 7, kind: input, shape index: {}]   ;;  %s1265_s8 = inlined_call_operand.vmem [shape: f32[1,128], index: 8, kind: input, shape index: {}]   ;;  %s1266_s9 = inlined_call_operand.hbm [shape: bf16[128,128], index: 9, kind: input, shape index: {}]   ;;  %s1267_s10 = inlined_call_operand.vmem [shape: f32[1,128], index: 10, kind: input, shape index: {}]   ;;  %s1268_s11 = inlined_call_operand.hbm [shape: f32[16,128], index: 11, kind: output, shape index: {}]  }
   0x1   :  { %17 = vsyncpa [#allocation7], 0 }
   0x2   :  { %18 = vsyncpa [#allocation10], 0 }
   0x3   :  { %19 = vsyncpa [#allocation13], 0 }
   0x4   :  { %20 = vsyncpa [#allocation5], 0  ;;  %s1104_s17 = smov [#allocation6]   ;;  %s1105_s19 = smov [#allocation9]  }
   0x5   :  { %s38_s18 = sshll.u32 %s1104_s17, 4  ;;  %s62_s20 = sshll.u32 %s1105_s19, 4  ;;  %s39_s18 = int_to_ptr.vmem [resolvable:$true] %s38_s18  ;;  %s63_s20 = int_to_ptr.vmem [resolvable:$true] %s62_s20 }
   0x6   :  { %s942_s21 = scalar_lea.vmem %s39_s18, 256  ;;  %p947_p1 = scmp.lt.s32.totalorder %s39_s18, %s39_s18 }
   0x7   :  { %p943_p0 = scmp.ne.s32.totalorder %s39_s18, %s942_s21  ;;  %p948_p2 = scmp.lt.s32.totalorder %s942_s21, %s942_s21 }
   0x9   :  { %p949_p3 = por %p948_p2, %p947_p1 }
   0xb   :  { %p950_p4 = pnand %p949_p3, %p943_p0 }
   0xd   :  { %953 = shalt.err (!%p950_p4)
}
   0xe   :  { %s1106_s22 = smov 128   ;;  %s1107_s23 = smov 8  }
   0xf   :  { %44 = dma.hbm_to_vmem [thread:$0]  %s1258_s1, 256, %s39_s18, [#allocation7], %s1106_s22, %s1106_s22, %s1107_s23  }
  0x10   :  { %s962_s26 = scalar_lea.vmem %s63_s20, 128  ;;  %p967_p6 = scmp.lt.s32.totalorder %s63_s20, %s63_s20 }
  0x11   :  { %p963_p5 = scmp.ne.s32.totalorder %s63_s20, %s962_s26  ;;  %p968_p7 = scmp.lt.s32.totalorder %s962_s26, %s962_s26 }
  0x13   :  { %p969_p8 = por %p968_p7, %p967_p6 }
  0x15   :  { %p970_p9 = pnand %p969_p8, %p963_p5 }
  0x17   :  { %973 = shalt.err (!%p970_p9)
}
  0x18   :  { %s1108_s27 = smov 64   ;;  %s1109_s28 = smov 4  }
  0x19   :  { %68 = dma.hbm_to_vmem [thread:$0]  %s1260_s3, 128, %s63_s20, [#allocation10], %s1108_s27, %s1108_s27, %s1109_s28  }
  0x1a   :  { %s1110_s12 = smov [#allocation12]   ;;  %s1111_s14 = smov [#allocation3]  }
  0x1b   :  { %s90_s13 = sshll.u32 %s1110_s12, 4  ;;  %s26_s1 = sshll.u32 %s1111_s14, 4  ;;  %s91_s13 = int_to_ptr.vmem [resolvable:$true] %s90_s13  ;;  %s27_s1 = int_to_ptr.vmem [resolvable:$true] %s26_s1 }
  0x1c   :  { %s982_s15 = scalar_lea.vmem %s91_s13, 2048  ;;  %p987_p11 = scmp.lt.s32.totalorder %s91_s13, %s91_s13 }
  0x1d   :  { %p983_p10 = scmp.ne.s32.totalorder %s91_s13, %s982_s15  ;;  %p988_p12 = scmp.lt.s32.totalorder %s982_s15, %s982_s15 }
  0x1f   :  { %p989_p13 = por %p988_p12, %p987_p11 }
  0x21   :  { %p990_p0 = pnand %p989_p13, %p983_p10 }
  0x23   :  { %993 = shalt.err (!%p990_p0)
}
  0x24   :  { %96 = dma.hbm_to_vmem [thread:$0]  %s1264_s7, 2048, %s91_s13, [#allocation13], %s1108_s27, %s1108_s27, %s1109_s28  }
  0x25   :  { %s1002_s3 = scalar_lea.vmem %s27_s1, 256  ;;  %p1007_p2 = scmp.lt.s32.totalorder %s27_s1, %s27_s1 }
  0x26   :  { %p1003_p1 = scmp.ne.s32.totalorder %s27_s1, %s1002_s3  ;;  %p1008_p3 = scmp.lt.s32.totalorder %s1002_s3, %s1002_s3 }
  0x28   :  { %p1009_p4 = por %p1008_p3, %p1007_p2 }
  0x2a   :  { %p1010_p5 = pnand %p1009_p4, %p1003_p1 }
  0x2c   :  { %1013 = shalt.err (!%p1010_p5)
}
  0x2d   :  { %32 = dma.hbm_to_vmem [thread:$0]  %s1257_s0, 256, %s27_s1, [#allocation4], %s1106_s22, %s1106_s22, %s1107_s23  }
  0x2e   :  { %s1112_s20 = smov [#allocation8]   ;;  %s1113_s24 = smov [#allocation11]  }
  0x2f   :  { %s50_s21 = sshll.u32 %s1112_s20, 4  ;;  %s76_s25 = sshll.u32 %s1113_s24, 4  ;;  %s51_s21 = int_to_ptr.vmem [resolvable:$true] %s50_s21  ;;  %s77_s25 = int_to_ptr.vmem [resolvable:$true] %s76_s25 }
  0x30   :  { %s1022_s7 = scalar_lea.vmem %s51_s21, 256  ;;  %p1027_p7 = scmp.lt.s32.totalorder %s51_s21, %s51_s21 }
  0x31   :  { %p1023_p6 = scmp.ne.s32.totalorder %s51_s21, %s1022_s7  ;;  %p1028_p8 = scmp.lt.s32.totalorder %s1022_s7, %s1022_s7 }
  0x33   :  { %p1029_p9 = por %p1028_p8, %p1027_p7 }
  0x35   :  { %p1030_p10 = pnand %p1029_p9, %p1023_p6 }
  0x37   :  { %1033 = shalt.err (!%p1030_p10)
}
  0x38   :  { %56 = dma.hbm_to_vmem [thread:$0]  %s1259_s2, 256, %s51_s21, [#allocation7], %s1106_s22, %s1106_s22, %s1107_s23  }
  0x39   :  { %s1042_s0 = scalar_lea.vmem %s77_s25, 2048  ;;  %p1047_p12 = scmp.lt.s32.totalorder %s77_s25, %s77_s25 }
  0x3a   :  { %p1043_p11 = scmp.ne.s32.totalorder %s77_s25, %s1042_s0  ;;  %p1048_p13 = scmp.lt.s32.totalorder %s1042_s0, %s1042_s0 }
  0x3c   :  { %p1049_p0 = por %p1048_p13, %p1047_p12 }
  0x3e   :  { %p1050_p1 = pnand %p1049_p0, %p1043_p11 }
  0x40   :  { %1053 = shalt.err (!%p1050_p1)
}
  0x41   :  { %82 = dma.hbm_to_vmem [thread:$0]  %s1262_s5, 2048, %s77_s25, [#allocation10], %s1106_s22, %s1106_s22, %s1107_s23  }
  0x42   :  { %s1114_s13 = smov [#allocation14]  }
  0x43   :  { %s104_s14 = sshll.u32 %s1114_s13, 4  ;;  %s105_s14 = int_to_ptr.vmem [resolvable:$true] %s104_s14 }
  0x44   :  { %s1062_s1 = scalar_lea.vmem %s105_s14, 1024  ;;  %p1067_p3 = scmp.lt.s32.totalorder %s105_s14, %s105_s14 }
  0x45   :  { %p1063_p2 = scmp.ne.s32.totalorder %s105_s14, %s1062_s1  ;;  %p1068_p4 = scmp.lt.s32.totalorder %s1062_s1, %s1062_s1 }
  0x47   :  { %p1069_p5 = por %p1068_p4, %p1067_p3 }
  0x49   :  { %p1070_p6 = pnand %p1069_p5, %p1063_p2 }
  0x4b   :  { %1073 = shalt.err (!%p1070_p6)
}
  0x4c   :  { %110 = dma.hbm_to_vmem [thread:$0]  %s1266_s9, 1024, %s105_s14, [#allocation13], %s1108_s27, %s1108_s27, %s1109_s28  }
  0x4d   :  { %1094 = dma.done.wait [#allocation4], 256  }
  0x4e   :  { %1095 = vsyncadd [#allocation4], 4294967040 }
  0x4f   :  { %1096 = dma.done.wait [#allocation7], 512  }
  0x50   :  { %1097 = vsyncadd [#allocation7], 4294966784 }
  0x51   :  { %1098 = dma.done.wait [#allocation10], 2176  }
  0x52   :  { %1099 = vsyncadd [#allocation10], 4294965120 }
  0x53   :  { %1100 = dma.done.wait [#allocation13], 3072  }
  0x54   :  { %1101 = vsyncadd [#allocation13], 4294964224  ;;  %v1115_v0 = vmov 0.0   ;;  %vm1116_vm0 = vmmov 0   ;;  %vm156_vm1 = vcmask 1044480   ;;  %v135_v2 = vld [vmem:[#allocation6] sm:$0xff] }
  0x55   :  { %836 = vmatprep.subr.bf16.mxu0 %v1115_v0  ;;  %838 = vmatprep.mubr.msk.bf16.mxu0 %vm1116_vm0, %v1115_v0  ;;  %v878_v1 = vld [vmem:[#allocation9] sm:$0x1f]   ;;  %v136_v3 = vld [vmem:[#allocation6 + $0x8] sm:$0xff]  ;;  %vm152_vm2 = vcmask 80896   ;;  %v231_v6 = vld [vmem:[#allocation8] sm:$0xff]  ;;  %vm213_vm3 = vcmask 257024  }
  0x56   :  { %v158_v4 = vsel %vm156_vm1, %v878_v1, 0  ;;  %v137_v5 = vpack.c.bf16 %v136_v3, %v135_v2  ;;  %v801_v7 = vpack.c.bf16 %v231_v6, %v231_v6  ;;  %v232_v8 = vld [vmem:[#allocation8 + $0x8] sm:$0xff]  ;;  %v882_v12 = vld [vmem:[#allocation11 + $0x64] ss:$8 sps:$4 sm:$0xff]   ;;  %v884_v14 = vld [vmem:[#allocation11 + $0x60] ss:$8 sps:$4 sm:$0xff]  }
  0x57   :  { %837 = vmatpush3.bf16.msra.mxu0 %v158_v4  ;;  %v802_v9 = vpack.c.bf16 %v232_v8, %v232_v8  ;;  %v879_v10 = vld [vmem:[#allocation11 + $0x74] ss:$8 sps:$4 sm:$0xff]   ;;  %v881_v11 = vld [vmem:[#allocation11 + $0x70] ss:$8 sps:$4 sm:$0xff]   ;;  %v203_v13 = vld [vmem:[#allocation3] sm:$0xff]  ;;  %v1117_v36 = vmov 0   ;;  %v271_v8 = vlaneseq }
  0x58   :  { %239 = vrot.lane.b32.xlu1 %v801_v7, %s1108_s27  ;;  %367 = vmatprep.subr.bf16.mxu1 %v879_v10  ;;  %v797_v15 = vpack.c.bf16 %v203_v13, %v203_v13  ;;  %v885_v16 = vld [vmem:[#allocation11 + $0x54] ss:$8 sps:$4 sm:$0xff]   ;;  %v887_v17 = vld [vmem:[#allocation11 + $0x50] ss:$8 sps:$4 sm:$0xff]   ;;  %v888_v18 = vld [vmem:[#allocation11 + $0x44] ss:$8 sps:$4 sm:$0xff]  }
  0x59   :  { %368 = vmatpush1.bf16.msra.mxu1 %v881_v11  ;;  %v890_v19 = vld [vmem:[#allocation11 + $0x40] ss:$8 sps:$4 sm:$0xff]   ;;  %v259_v20 = vld [vmem:[#allocation11 + $0x30] sm:$0xff]  ;;  %v260_v21 = vld [vmem:[#allocation11 + $0x38] sm:$0xff]  ;;  %399 = vmatprep.mubr.bf16.mxu1 %v1117_v36  ;;  %vm228_vm4 = vcmask 519424   ;;  %vm245_vm5 = vcmask 781824  }
  0x5a   :  { %839 = vmatmul.mubr.msk.bf16.vlgmr.msra.gmra.mxu0 %vm152_vm2, %v137_v5  ;;  %369 = vmatprep.subr.bf16.mxu1 %v882_v12  ;;  %214 = vst.msk [vmem:[#allocation2] sm:$0xf] %vm213_vm3, %v797_v15  ;;  %v891_v22 = vld [vmem:[#allocation11 + $0x34] ss:$8 sps:$4 sm:$0xff]   ;;  %v759_v23 = vcombine.low %v259_v20, %v260_v21  ;;  %v257_v26 = vld [vmem:[#allocation11 + $0x20] sm:$0xff]  ;;  %v258_v27 = vld [vmem:[#allocation11 + $0x28] sm:$0xff] }
  0x5b   :  { %v204_v24 = vld [vmem:[#allocation3 + $0x8] sm:$0xff]  ;;  %v893_v28 = vld [vmem:[#allocation11 + $0x24] ss:$8 sps:$4 sm:$0xff]   ;;  %v757_v29 = vcombine.low %v257_v26, %v258_v27  ;;  %v743_v30 = vld [vmem:[%s1261_s4] ss:$0 sm:$0xff]  ;;  %s1118_s4 = smov 32  }
  0x5c   :  { %241 = vrot.lane.b32.xlu1 %v802_v9, %s1108_s27  ;;  %v798_v25 = vpack.c.bf16 %v204_v24, %v204_v24  ;;  %v895_v31 = vld [vmem:[#allocation11 + $0x14] ss:$8 sps:$4 sm:$0xff]   ;;  %v897_v32 = vld [vmem:[#allocation11 + $0x10] ss:$8 sps:$4 sm:$0xff]   ;;  %v898_v33 = vld [vmem:[#allocation11 + $0x4] ss:$8 sps:$4 sm:$0xff]  }
  0x5d   :  { %370 = vmatpush1.bf16.msra.mxu1 %v884_v14  ;;  %v900_v38 = vld [vmem:[#allocation11] ss:$8 sps:$4 sm:$0xff]   ;;  %v902_v46 = vld [vmem:[#allocation12 + $0x78] sm:$0xff]   ;;  %v904_v48 = vld [vmem:[#allocation12 + $0x70] sm:$0xff]   ;;  %vm248_vm6 = vcmask 1044224   ;;  %v272_v9 = vshrl.u32 %v271_v8, 7 }
  0x5e   :  { %371 = vmatprep.subr.bf16.mxu1 %v885_v16  ;;  %215 = vst.msk [vmem:[#allocation2 + $0x4] sm:$0xf] %vm213_vm3, %v798_v25  ;;  %v903_v47 = vld [vmem:[#allocation12 + $0x38] sm:$0xff]   ;;  %805 = vmatprep.subr.bf16.mxu0 %v902_v46  ;;  %v905_v49 = vld [vmem:[#allocation12 + $0x30] sm:$0xff]   ;;  %v906_v50 = vld [vmem:[#allocation12 + $0x68] sm:$0xff]  }
  0x5f   :  { %806 = vmatpush3.bf16.msra.mxu0 %v903_v47  ;;  %v907_v51 = vld [vmem:[#allocation12 + $0x28] sm:$0xff]   ;;  %v908_v52 = vld [vmem:[#allocation12 + $0x60] sm:$0xff]   ;;  %v910_v54 = vld [vmem:[#allocation12 + $0x58] sm:$0xff]   ;;  %v277_v10 = vsub.s32 1, %v272_v9  ;;  %v273_v11 = vsub.s32 0, %v272_v9 }
  0x60   :  { %807 = vmatprep.subr.bf16.mxu0 %v904_v48  ;;  %v909_v53 = vld [vmem:[#allocation12 + $0x20] sm:$0xff]   ;;  %v911_v55 = vld [vmem:[#allocation12 + $0x18] sm:$0xff]   ;;  %v912_v61 = vld [vmem:[#allocation12 + $0x50] sm:$0xff]  }
  0x61   :  { %372 = vmatpush1.bf16.msra.mxu1 %v887_v17  ;;  %v913_v62 = vld [vmem:[#allocation12 + $0x10] sm:$0xff]   ;;  %v914_v63 = vld [vmem:[#allocation12 + $0x48] sm:$0xff]   ;;  %v916_v2 = vld [vmem:[#allocation12 + $0x40] sm:$0xff]  }
  0x62   :  { %373 = vmatprep.subr.bf16.mxu1 %v888_v18  ;;  %v915_v1 = vld [vmem:[#allocation12 + $0x8] sm:$0xff]   ;;  %v917_v3 = vld [vmem:[#allocation12] sm:$0xff]   ;;  %v918_v4 = vld [vmem:[#allocation14 + $0x38] sm:$0xff]  }
  0x63   :  { %808 = vmatpush3.bf16.msra.mxu0 %v905_v49  ;;  %v919_v5 = vld [vmem:[#allocation14 + $0x30] sm:$0xff]   ;;  %v920_v6 = vld [vmem:[#allocation14 + $0x28] sm:$0xff]   ;;  %v921_v7 = vld [vmem:[#allocation14 + $0x20] sm:$0xff]  }
  0x64   :  { %809 = vmatprep.subr.bf16.mxu0 %v906_v50  ;;  %v269_v12 = vld [vmem:[%s1263_s6] sm:$0x3] }
  0x65   :  { %374 = vmatpush1.bf16.msra.mxu1 %v890_v19  ;;  %v278_v14 = vrot.slane %v269_v12, %v277_v10  ;;  %v274_v15 = vrot.slane %v269_v12, %v273_v11 }
  0x66   :  { %375 = vmatprep.subr.bf16.mxu1 %v891_v22 }
  0x67   :  { %810 = vmatpush3.bf16.msra.mxu0 %v907_v51 }
  0x68   :  { %811 = vmatprep.subr.bf16.mxu0 %v908_v52 }
  0x69   :  { %376 = vmatpush1.bf16.msra.mxu1 %v759_v23 }
  0x6a   :  { %377 = vmatprep.subr.bf16.mxu1 %v893_v28 }
  0x6b   :  { %812 = vmatpush3.bf16.msra.mxu0 %v909_v53 }
  0x6c   :  { %813 = vmatprep.subr.bf16.mxu0 %v910_v54 }
  0x6d   :  { %378 = vmatpush1.bf16.msra.mxu1 %v757_v29  ;;  %v922_v29 = vld [vmem:[#allocation14 + $0x18] sm:$0xff]  }
  0x6e   :  { %379 = vmatprep.subr.bf16.mxu1 %v895_v31  ;;  %v924_v31 = vld [vmem:[#allocation14 + $0x8] sm:$0xff]  }
  0x6f   :  { %814 = vmatpush3.bf16.msra.mxu0 %v911_v55 }
  0x70   :  { %815 = vmatprep.subr.bf16.mxu0 %v912_v61 }
  0x71   :  { %380 = vmatpush1.bf16.msra.mxu1 %v897_v32  ;;  %v925_v32 = vld [vmem:[#allocation14] sm:$0xff]  }
  0x72   :  { %381 = vmatprep.subr.bf16.mxu1 %v898_v33 }
  0x73   :  { %816 = vmatpush3.bf16.msra.mxu0 %v913_v62 }
  0x74   :  { %817 = vmatprep.subr.bf16.mxu0 %v914_v63 }
  0x75   :  { %382 = vmatpush1.bf16.msra.mxu1 %v900_v38 }
  0x76   :  { %842 = vmatprep.subr.bf16.mxu1 %v1115_v0 }
  0x77   :  { %818 = vmatpush3.bf16.msra.mxu0 %v915_v1 }
  0x78   :  { %819 = vmatprep.subr.bf16.mxu0 %v916_v2 }
  0x7b   :  { %820 = vmatpush3.bf16.msra.mxu0 %v917_v3 }
  0xca   :  { %v240_v56 = vpop.permute.xlu1 %239 }
  0xce   :  { %v242_v58 = vpop.permute.xlu1 %241 }
 0x11a   :  { %v194_v34 = vpop.f32.mrf.mxu0 }
 0x11b   :  { %v195_v35 = vadd.f32 %v743_v30, %v194_v34 }
 0x11c   :  { %v840_v37 = vpop.f32.mrf.mxu0 }
 0x11d   :  { %v201_v39 = vmax.f32 %v195_v35, 0.0 }
 0x11e   :  { %v197_v40 = vpop.f32.mrf.mxu0 }
 0x11f   :  { %v198_v41 = vadd.f32 %v743_v30, %v197_v40  ;;  %v799_v42 = vpack.c.bf16 %v201_v39, %v201_v39  ;;  %v923_v30 = vld [vmem:[#allocation14 + $0x10] sm:$0xff]  }
 0x120   :  { %v841_v43 = vpop.f32.mrf.mxu0 }
 0x121   :  { %v202_v44 = vmax.f32 %v198_v41, 0.0  ;;  %222 = vrot.lane.b32.xlu0 %v799_v42, %s1118_s4 }
 0x123   :  { %v800_v45 = vpack.c.bf16 %v202_v44, %v202_v44 }
 0x125   :  { %224 = vrot.lane.b32.xlu0 %v800_v45, %s1118_s4 }
 0x193   :  { %v223_v57 = vpop.permute.xlu0 %222 }
 0x194   :  { %229 = vst.msk [vmem:[#allocation2] sm:$0xf] %vm228_vm4, %v223_v57 }
 0x195   :  { %246 = vst.msk [vmem:[#allocation2] sm:$0xf] %vm245_vm5, %v240_v56 }
 0x196   :  { %249 = vst.msk [vmem:[#allocation2] sm:$0xf] %vm248_vm6, %v1117_v36 }
 0x197   :  { %v225_v59 = vpop.permute.xlu0 %224 }
 0x198   :  { %230 = vst.msk [vmem:[#allocation2 + $0x4] sm:$0xf] %vm228_vm4, %v225_v59 }
 0x199   :  { %247 = vst.msk [vmem:[#allocation2 + $0x4] sm:$0xf] %vm245_vm5, %v242_v58 }
 0x19a   :  { %250 = vst.msk [vmem:[#allocation2 + $0x4] sm:$0xf] %vm248_vm6, %v1117_v36  ;;  %v769_v36 = vld [vmem:[%s1265_s8] ss:$0 sm:$0xff]  ;;  %s1119_s8 = smov [#allocation15]  }
 0x1a1   :  { %v901_v60 = vld [vmem:[#allocation2] sm:$0xff]  }
 0x1a2   :  { %400 = vmatmul.mubr.bf16.vlgmr.msra.gmra.mxu1 %v901_v60 }
 0x1a3   :  { %858 = vmatprep.mubr.msk.bf16.mxu1 %vm1116_vm0, %v1115_v0  ;;  %843 = vmatpush3.bf16.msra.mxu1 %v918_v4 }
 0x1a4   :  { %844 = vmatprep.subr.bf16.mxu1 %v1115_v0 }
 0x1a7   :  { %845 = vmatpush3.bf16.msra.mxu1 %v919_v5 }
 0x1a8   :  { %846 = vmatprep.subr.bf16.mxu1 %v1115_v0 }
 0x1ab   :  { %847 = vmatpush3.bf16.msra.mxu1 %v920_v6 }
 0x1ac   :  { %848 = vmatprep.subr.bf16.mxu1 %v1115_v0 }
 0x1af   :  { %849 = vmatpush3.bf16.msra.mxu1 %v921_v7 }
 0x1b0   :  { %850 = vmatprep.subr.bf16.mxu1 %v1115_v0 }
 0x1b3   :  { %851 = vmatpush3.bf16.msra.mxu1 %v922_v29 }
 0x1b4   :  { %852 = vmatprep.subr.bf16.mxu1 %v1115_v0 }
 0x1b7   :  { %853 = vmatpush3.bf16.msra.mxu1 %v923_v30 }
 0x1b8   :  { %854 = vmatprep.subr.bf16.mxu1 %v1115_v0 }
 0x1bb   :  { %855 = vmatpush3.bf16.msra.mxu1 %v924_v31 }
 0x1bc   :  { %856 = vmatprep.subr.bf16.mxu1 %v1115_v0  ;;  %v786_v0 = vld [vmem:[%s1267_s10] ss:$0 sm:$0xff]  ;;  %s728_s10 = sshll.u32 %s1119_s8, 4  ;;  %s729_s10 = int_to_ptr.vmem [resolvable:$true] %s728_s10 }
 0x1bd   :  { %s1074_s18 = scalar_lea.vmem %s729_s10, 256  ;;  %p1079_p8 = scmp.lt.s32.totalorder %s729_s10, %s729_s10 }
 0x1be   :  { %p1075_p7 = scmp.ne.s32.totalorder %s729_s10, %s1074_s18  ;;  %p1080_p9 = scmp.lt.s32.totalorder %s1074_s18, %s1074_s18 }
 0x1bf   :  { %857 = vmatpush3.bf16.msra.mxu1 %v925_v32 }
 0x1c0   :  { %p1081_p10 = por %p1080_p9, %p1079_p8 }
 0x1c2   :  { %p1082_p11 = pnand %p1081_p10, %p1075_p7 }
 0x262   :  { %v401_v13 = vpop.f32.mrf.mxu1 }
 0x263   :  { %v402_v20 = vadd.f32 %v401_v13, %v274_v15 }
 0x264   :  { %v403_v16 = vpop.f32.mrf.mxu1 }
 0x265   :  { %v404_v18 = vadd.f32 %v403_v16, %v278_v14  ;;  %v410_v26 = vmax.f32 %v402_v20, 0.0 }
 0x266   :  { %v405_v17 = vpop.f32.mrf.mxu1 }
 0x267   :  { %v406_v19 = vadd.f32 %v405_v17, %v274_v15  ;;  %v411_v24 = vmax.f32 %v404_v18, 0.0 }
 0x268   :  { %v407_v21 = vpop.f32.mrf.mxu1 }
 0x269   :  { %v408_v22 = vadd.f32 %v407_v21, %v278_v14  ;;  %v412_v23 = vmax.f32 %v406_v19, 0.0 }
 0x26b   :  { %v413_v25 = vmax.f32 %v408_v22, 0.0  ;;  %v414_v28 = vpack.c.bf16 %v412_v23, %v410_v26 }
 0x26d   :  { %v415_v27 = vpack.c.bf16 %v413_v25, %v411_v24 }
 0x26f   :  { %583 = vmatprep.mubr.bf16.mxu0 %v415_v27 }
 0x270   :  { %584 = vmatmul.mubr.bf16.vlgmr.msra.gmra.mxu0 %v414_v28 }
 0x330   :  { %v821_v33 = vpop.f32.mrf.mxu0 }
 0x332   :  { %v822_v34 = vpop.f32.mrf.mxu0 }
 0x333   :  { %v823_v35 = vadd.f32 %v822_v34, %v821_v33 }
 0x334   :  { %v824_v37 = vpop.f32.mrf.mxu0 }
 0x335   :  { %v586_v39 = vadd.f32 %v823_v35, %v769_v36 }
 0x336   :  { %v825_v38 = vpop.f32.mrf.mxu0 }
 0x337   :  { %v826_v40 = vadd.f32 %v825_v38, %v824_v37  ;;  %v592_v42 = vmax.f32 %v586_v39, 0.0 }
 0x339   :  { %v589_v41 = vadd.f32 %v826_v40, %v769_v36 }
 0x33b   :  { %v593_v43 = vmax.f32 %v589_v41, 0.0 }
 0x33d   :  { %v594_v44 = vpack.c.bf16 %v593_v43, %v592_v42 }
 0x33f   :  { %859 = vmatmul.mubr.bf16.vlgmr.msra.gmra.mxu1 %v594_v44 }
 0x3ff   :  { %v700_v45 = vpop.f32.mrf.mxu1 }
 0x400   :  { %v701_v46 = vadd.f32 %v786_v0, %v700_v45 }
 0x401   :  { %v860_v47 = vpop.f32.mrf.mxu1 }
 0x402   :  { %v795_v48 = vmul.f32 -1.442695, %v701_v46 }
 0x403   :  { %v703_v49 = vpop.f32.mrf.mxu1 }
 0x404   :  { %926 = vpow2.f32 %v795_v48  ;;  %v704_v50 = vadd.f32 %v786_v0, %v703_v49 }
 0x405   :  { %v861_v51 = vpop.f32.mrf.mxu1 }
 0x406   :  { %v796_v52 = vmul.f32 -1.442695, %v704_v50 }
 0x408   :  { %928 = vpow2.f32 %v796_v52 }
 0x411   :  { %v927_v53 = vpop.eup %926 }
 0x412   :  { %v713_v54 = vadd.f32 1.0, %v927_v53 }
 0x414   :  { %930 = vrcp.f32 %v713_v54 }
 0x415   :  { %v929_v55 = vpop.eup %928 }
 0x416   :  { %v714_v56 = vadd.f32 1.0, %v929_v55 }
 0x418   :  { %932 = vrcp.f32 %v714_v56 }
 0x421   :  { %v931_v57 = vpop.eup %930 }
 0x422   :  { %v719_v58 = vmul.f32 255.0, %v931_v57 }
 0x424   :  { %721 = vst [vmem:[#allocation15] sm:$0xff] %v719_v58 }
 0x425   :  { %v933_v59 = vpop.eup %932 }
 0x426   :  { %v720_v60 = vmul.f32 255.0, %v933_v59 }
 0x428   :  { %722 = vst [vmem:[#allocation15 + $0x8] sm:$0xff] %v720_v60 }
 0x429   :  { %1085 = shalt.err (!%p1082_p11)
}
 0x42a   :  { %734 = dma.vmem_to_hbm [thread:$0]  %s729_s10, 256, %s1268_s11, [#allocation5], %s1106_s22, %s1106_s22, %s1107_s23  }
 0x42b   :  { %1102 = dma.done.wait [#allocation5], 256  }
 0x42c   :  { %1103 = vsyncadd [#allocation5], 4294967040 }
 0x42d   :  { %738 = vsyncpa [#allocation4], 1 }
 0x42e   :  { %739 = vsyncpa [#allocation7], 1 }
 0x42f   :  { %740 = vsyncpa [#allocation10], 1 }
 0x430   :  { %741 = vsyncpa [#allocation13], 1 }
 0x431   :  { %742 = vsyncpa [#allocation5], 1 }

</bundles_post_ra>
